<compile_context>
chip_gen: v7x
topology: tpu7x:2x2x1
jax: 0.10.0
libtpu: 0.0.40
codegen_flags: <defaults>
</compile_context>

<pallas_src>
import jax
import jax.numpy as jnp
import numpy as np
from jax.experimental import pallas as pl
from jax.experimental.pallas import tpu as pltpu


# --------------------------- Fused forward kernel ----------------------------
def _rnn_lm_kernel(xproj_ref, whh_ref, wlin_ref, blin_ref, out_ref, hs_ref):
    """tanh-RNN recurrence + deferred output Linear.

    xproj_ref: (S, B, H)  f32 VMEM -- pre-gathered  embed[x] @ W_ih^T + b_ih + b_hh
    whh_ref  : (H, H)     f32 VMEM -- W_hh^T
    wlin_ref : (H, Vp)    f32 VMEM -- W_lin^T, zero-padded to lane-dense Vp
    blin_ref : (1, Vp)    f32 VMEM -- b_lin, zero-padded
    out_ref  : (B*S, Vp)  f32 VMEM -- rows in (b, t) order (matches torch reshape)
    hs_ref   : (S, B, H)  f32 VMEM scratch -- per-step hidden states
    """
    S, B, H = xproj_ref.shape

    # Hoist all loads out of the serial recurrence.
    xp = xproj_ref[...]        # (S, B, H)
    whh = whh_ref[...]         # (H, H)

    h = jnp.zeros((B, H), jnp.float32)
    # Serial recurrence: per step only add + matmul + tanh.
    # TODO(synk): switch to lax.fori_loop(..., unroll=4..8) with a dynamic
    #             leading-axis store once S grows beyond a handful of steps.
    for t in range(S):  # static unroll: S is a compile-time constant
        h = jnp.tanh(xp[t] + jnp.dot(h, whh, preferred_element_type=jnp.float32))
        hs_ref[t] = h          # per-step store; keeps live state O(1)

    # Deferred output projection: lane-dense (S, H) @ (H, Vp) matmuls, one per
    # batch row-block, so rows land directly in (b, t) order (no stack/transpose).
    wlin = wlin_ref[...]
    blin = blin_ref[...]
    hs = hs_ref[...]           # (S, B, H)
    for b in range(B):
        out_ref[pl.ds(b * S, S), :] = (
            jnp.dot(hs[:, b, :], wlin, preferred_element_type=jnp.float32) + blin
        )


# ------------------------------ Full model -----------------------------------
@jax.jit
def rnn_lm_forward(tokens, params):
    """tokens: (B, S) int32 -> logits (B*S, vocab), matching the PyTorch forward."""
    emb = params["embed"]    # (V, E)
    w_ih = params["w_ih"]    # (H, E)   (PyTorch weight_ih_l0)
    w_hh = params["w_hh"]    # (H, H)   (PyTorch weight_hh_l0)
    b_ih = params["b_ih"]    # (H,)
    b_hh = params["b_hh"]    # (H,)
    w_lin = params["w_lin"]  # (V, H)
    b_lin = params["b_lin"]  # (V,)

    B, S = tokens.shape
    V, E = emb.shape
    H = w_hh.shape[0]
    LANE = 128
    Vp = ((V + LANE - 1) // LANE) * LANE   # lane-dense padded vocab

    # ---- One-time, time-invariant weight prep (off the recurrence path) ----
    # Fold the input projection and both RNN biases into the embedding table,
    # then pre-gather all projected embeddings (time-major for leading-axis reads).
    emb_proj = (emb.astype(jnp.float32) @ w_ih.T.astype(jnp.float32)
                + (b_ih + b_hh).astype(jnp.float32))            # (V, H)
    xproj = jnp.take(emb_proj, tokens.T, axis=0)                # (S, B, H)
    # (XLA's gather clamps out-of-range token ids, so no explicit clamp needed.)

    # Lane-dense (multiple-of-128) output-projection operands.
    w_lin_p = jnp.zeros((H, Vp), jnp.float32).at[:, :V].set(w_lin.T.astype(jnp.float32))
    b_lin_p = jnp.zeros((1, Vp), jnp.float32).at[:, :V].set(b_lin.astype(jnp.float32)[None, :])

    vmem = pl.BlockSpec(memory_space=pltpu.MemorySpace.VMEM)
    out = pl.pallas_call(
        _rnn_lm_kernel,
        out_shape=jax.ShapeDtypeStruct((B * S, Vp), jnp.float32),
        in_specs=[vmem, vmem, vmem, vmem],
        out_specs=vmem,
        scratch_shapes=[pltpu.VMEM((S, B, H), jnp.float32)],
    )(xproj.astype(jnp.float32), w_hh.T.astype(jnp.float32), w_lin_p, b_lin_p)

    # Rows are already ordered (b, t); just drop the lane padding.
    return out[:, :V]


# ------------------------- Pure-JAX reference --------------------------------
def rnn_lm_reference(tokens, params):
    emb, w_ih, w_hh = params["embed"], params["w_ih"], params["w_hh"]
    b_ih, b_hh, w_lin, b_lin = (
        params["b_ih"], params["b_hh"], params["w_lin"], params["b_lin"]
    )
    x = jnp.take(emb, tokens, axis=0)  # (B, S, E)
    B, S, E = x.shape
    H = w_hh.shape[0]
    h = jnp.zeros((B, H), jnp.float32)
    hs = []
    for t in range(S):
        h = jnp.tanh(x[:, t, :] @ w_ih.T + b_ih + h @ w_hh.T + b_hh)
        hs.append(h)
    hs = jnp.stack(hs, axis=1)  # (B, S, H)
    return hs.reshape(-1, H) @ w_lin.T + b_lin


if __name__ == "__main__":
    # Small, deterministic config. CONSTANTS.embed_size := 32.
    VOCAB, EMBED, HIDDEN = 16, 32, 32
    BATCH, SEQ = 2, 8

    key = jax.random.PRNGKey(0)
    keys = jax.random.split(key, 8)
    k = 1.0 / np.sqrt(HIDDEN)
    params = {
        "embed": jax.random.normal(keys[0], (VOCAB, EMBED), jnp.float32),
        "w_ih": jax.random.uniform(keys[1], (HIDDEN, EMBED), jnp.float32, -k, k),
        "w_hh": jax.random.uniform(keys[2], (HIDDEN, HIDDEN), jnp.float32, -k, k),
        "b_ih": jax.random.uniform(keys[3], (HIDDEN,), jnp.float32, -k, k),
        "b_hh": jax.random.uniform(keys[4], (HIDDEN,), jnp.float32, -k, k),
        "w_lin": jax.random.uniform(keys[5], (VOCAB, HIDDEN), jnp.float32, -k, k),
        "b_lin": jax.random.uniform(keys[6], (VOCAB,), jnp.float32, -k, k),
    }
    tokens = jax.random.randint(keys[7], (BATCH, SEQ), 0, VOCAB, jnp.int32)

    out = rnn_lm_forward(tokens, params)
    out = jax.block_until_ready(out)

    ref = rnn_lm_reference(tokens, params)
    np.testing.assert_allclose(np.asarray(out), np.asarray(ref), rtol=1e-4, atol=1e-4)
    assert out.shape == (BATCH * SEQ, VOCAB)

    print("KERNEL_OK")
</pallas_src>

<mosaic_0001>
module attributes {stable_mosaic.version = 11 : i64} {
  func.func @_rnn_lm_kernel(%arg0: memref<8x2x32xf32, #tpu.memory_space<vmem>>, %arg1: memref<32x32xf32, #tpu.memory_space<vmem>>, %arg2: memref<32x128xf32, #tpu.memory_space<vmem>>, %arg3: memref<1x128xf32, #tpu.memory_space<vmem>>, %arg4: memref<16x128xf32, #tpu.memory_space<vmem>>, %arg5: memref<8x2x32xf32, #tpu.memory_space<vmem>>) attributes {dimension_semantics = [], scalar_prefetch = 0 : i64, scratch_operands = 1 : i64, tpu.core_type = #tpu.core_type<tc>} {
    %c0 = arith.constant 0 : index
    %c0_0 = arith.constant 0 : index
    %c0_1 = arith.constant 0 : index
    %0 = vector.load %arg0[%c0, %c0_0, %c0_1] : memref<8x2x32xf32, #tpu.memory_space<vmem>>, vector<8x2x32xf32>
    %c0_2 = arith.constant 0 : index
    %c0_3 = arith.constant 0 : index
    %1 = vector.load %arg1[%c0_2, %c0_3] : memref<32x32xf32, #tpu.memory_space<vmem>>, vector<32x32xf32>
    %cst = arith.constant 0.000000e+00 : f32
    %2 = vector.broadcast %cst : f32 to vector<2x32xf32>
    %3 = vector.extract_strided_slice %0 {offsets = [0, 0, 0], sizes = [1, 2, 32], strides = [1, 1, 1]} : vector<8x2x32xf32> to vector<1x2x32xf32>
    %4 = vector.shape_cast %3 : vector<1x2x32xf32> to vector<2x32xf32>
    %cst_4 = arith.constant dense<0.000000e+00> : vector<2x32xf32>
    %5 = tpu.matmul %2, %1, %cst_4 {dimension_numbers = #tpu.dot_dimension_numbers<[1], [0], [0], [1], [0, 0, 1, 1], [], []>} : vector<2x32xf32>, vector<32x32xf32>, vector<2x32xf32> -> vector<2x32xf32>
    %6 = arith.addf %4, %5 : vector<2x32xf32>
    %7 = math.tanh %6 : vector<2x32xf32>
    %c0_5 = arith.constant 0 : index
    %c0_6 = arith.constant 0 : index
    %c0_7 = arith.constant 0 : index
    %8 = vector.load %arg5[%c0_5, %c0_6, %c0_7] : memref<8x2x32xf32, #tpu.memory_space<vmem>>, vector<1x2x32xf32>
    %9 = vector.shape_cast %8 : vector<1x2x32xf32> to vector<2x32xf32>
    %10 = vector.shape_cast %7 : vector<2x32xf32> to vector<1x2x32xf32>
    tpu.vector_store %arg5[%c0_5, %c0_6, %c0_7], %10 {strides = array<i32>} : memref<8x2x32xf32, #tpu.memory_space<vmem>>, vector<1x2x32xf32>,
    %11 = vector.extract_strided_slice %0 {offsets = [1, 0, 0], sizes = [1, 2, 32], strides = [1, 1, 1]} : vector<8x2x32xf32> to vector<1x2x32xf32>
    %12 = vector.shape_cast %11 : vector<1x2x32xf32> to vector<2x32xf32>
    %cst_8 = arith.constant dense<0.000000e+00> : vector<2x32xf32>
    %13 = tpu.matmul %7, %1, %cst_8 {dimension_numbers = #tpu.dot_dimension_numbers<[1], [0], [0], [1], [0, 0, 1, 1], [], []>} : vector<2x32xf32>, vector<32x32xf32>, vector<2x32xf32> -> vector<2x32xf32>
    %14 = arith.addf %12, %13 : vector<2x32xf32>
    %15 = math.tanh %14 : vector<2x32xf32>
    %c1 = arith.constant 1 : index
    %c0_9 = arith.constant 0 : index
    %c0_10 = arith.constant 0 : index
    %16 = vector.load %arg5[%c1, %c0_9, %c0_10] : memref<8x2x32xf32, #tpu.memory_space<vmem>>, vector<1x2x32xf32>
    %17 = vector.shape_cast %16 : vector<1x2x32xf32> to vector<2x32xf32>
    %18 = vector.shape_cast %15 : vector<2x32xf32> to vector<1x2x32xf32>
    tpu.vector_store %arg5[%c1, %c0_9, %c0_10], %18 {strides = array<i32>} : memref<8x2x32xf32, #tpu.memory_space<vmem>>, vector<1x2x32xf32>,
    %19 = vector.extract_strided_slice %0 {offsets = [2, 0, 0], sizes = [1, 2, 32], strides = [1, 1, 1]} : vector<8x2x32xf32> to vector<1x2x32xf32>
    %20 = vector.shape_cast %19 : vector<1x2x32xf32> to vector<2x32xf32>
    %cst_11 = arith.constant dense<0.000000e+00> : vector<2x32xf32>
    %21 = tpu.matmul %15, %1, %cst_11 {dimension_numbers = #tpu.dot_dimension_numbers<[1], [0], [0], [1], [0, 0, 1, 1], [], []>} : vector<2x32xf32>, vector<32x32xf32>, vector<2x32xf32> -> vector<2x32xf32>
    %22 = arith.addf %20, %21 : vector<2x32xf32>
    %23 = math.tanh %22 : vector<2x32xf32>
    %c2 = arith.constant 2 : index
    %c0_12 = arith.constant 0 : index
    %c0_13 = arith.constant 0 : index
    %24 = vector.load %arg5[%c2, %c0_12, %c0_13] : memref<8x2x32xf32, #tpu.memory_space<vmem>>, vector<1x2x32xf32>
    %25 = vector.shape_cast %24 : vector<1x2x32xf32> to vector<2x32xf32>
    %26 = vector.shape_cast %23 : vector<2x32xf32> to vector<1x2x32xf32>
    tpu.vector_store %arg5[%c2, %c0_12, %c0_13], %26 {strides = array<i32>} : memref<8x2x32xf32, #tpu.memory_space<vmem>>, vector<1x2x32xf32>,
    %27 = vector.extract_strided_slice %0 {offsets = [3, 0, 0], sizes = [1, 2, 32], strides = [1, 1, 1]} : vector<8x2x32xf32> to vector<1x2x32xf32>
    %28 = vector.shape_cast %27 : vector<1x2x32xf32> to vector<2x32xf32>
    %cst_14 = arith.constant dense<0.000000e+00> : vector<2x32xf32>
    %29 = tpu.matmul %23, %1, %cst_14 {dimension_numbers = #tpu.dot_dimension_numbers<[1], [0], [0], [1], [0, 0, 1, 1], [], []>} : vector<2x32xf32>, vector<32x32xf32>, vector<2x32xf32> -> vector<2x32xf32>
    %30 = arith.addf %28, %29 : vector<2x32xf32>
    %31 = math.tanh %30 : vector<2x32xf32>
    %c3 = arith.constant 3 : index
    %c0_15 = arith.constant 0 : index
    %c0_16 = arith.constant 0 : index
    %32 = vector.load %arg5[%c3, %c0_15, %c0_16] : memref<8x2x32xf32, #tpu.memory_space<vmem>>, vector<1x2x32xf32>
    %33 = vector.shape_cast %32 : vector<1x2x32xf32> to vector<2x32xf32>
    %34 = vector.shape_cast %31 : vector<2x32xf32> to vector<1x2x32xf32>
    tpu.vector_store %arg5[%c3, %c0_15, %c0_16], %34 {strides = array<i32>} : memref<8x2x32xf32, #tpu.memory_space<vmem>>, vector<1x2x32xf32>,
    %35 = vector.extract_strided_slice %0 {offsets = [4, 0, 0], sizes = [1, 2, 32], strides = [1, 1, 1]} : vector<8x2x32xf32> to vector<1x2x32xf32>
    %36 = vector.shape_cast %35 : vector<1x2x32xf32> to vector<2x32xf32>
    %cst_17 = arith.constant dense<0.000000e+00> : vector<2x32xf32>
    %37 = tpu.matmul %31, %1, %cst_17 {dimension_numbers = #tpu.dot_dimension_numbers<[1], [0], [0], [1], [0, 0, 1, 1], [], []>} : vector<2x32xf32>, vector<32x32xf32>, vector<2x32xf32> -> vector<2x32xf32>
    %38 = arith.addf %36, %37 : vector<2x32xf32>
    %39 = math.tanh %38 : vector<2x32xf32>
    %c4 = arith.constant 4 : index
    %c0_18 = arith.constant 0 : index
    %c0_19 = arith.constant 0 : index
    %40 = vector.load %arg5[%c4, %c0_18, %c0_19] : memref<8x2x32xf32, #tpu.memory_space<vmem>>, vector<1x2x32xf32>
    %41 = vector.shape_cast %40 : vector<1x2x32xf32> to vector<2x32xf32>
    %42 = vector.shape_cast %39 : vector<2x32xf32> to vector<1x2x32xf32>
    tpu.vector_store %arg5[%c4, %c0_18, %c0_19], %42 {strides = array<i32>} : memref<8x2x32xf32, #tpu.memory_space<vmem>>, vector<1x2x32xf32>,
    %43 = vector.extract_strided_slice %0 {offsets = [5, 0, 0], sizes = [1, 2, 32], strides = [1, 1, 1]} : vector<8x2x32xf32> to vector<1x2x32xf32>
    %44 = vector.shape_cast %43 : vector<1x2x32xf32> to vector<2x32xf32>
    %cst_20 = arith.constant dense<0.000000e+00> : vector<2x32xf32>
    %45 = tpu.matmul %39, %1, %cst_20 {dimension_numbers = #tpu.dot_dimension_numbers<[1], [0], [0], [1], [0, 0, 1, 1], [], []>} : vector<2x32xf32>, vector<32x32xf32>, vector<2x32xf32> -> vector<2x32xf32>
    %46 = arith.addf %44, %45 : vector<2x32xf32>
    %47 = math.tanh %46 : vector<2x32xf32>
    %c5 = arith.constant 5 : index
    %c0_21 = arith.constant 0 : index
    %c0_22 = arith.constant 0 : index
    %48 = vector.load %arg5[%c5, %c0_21, %c0_22] : memref<8x2x32xf32, #tpu.memory_space<vmem>>, vector<1x2x32xf32>
    %49 = vector.shape_cast %48 : vector<1x2x32xf32> to vector<2x32xf32>
    %50 = vector.shape_cast %47 : vector<2x32xf32> to vector<1x2x32xf32>
    tpu.vector_store %arg5[%c5, %c0_21, %c0_22], %50 {strides = array<i32>} : memref<8x2x32xf32, #tpu.memory_space<vmem>>, vector<1x2x32xf32>,
    %51 = vector.extract_strided_slice %0 {offsets = [6, 0, 0], sizes = [1, 2, 32], strides = [1, 1, 1]} : vector<8x2x32xf32> to vector<1x2x32xf32>
    %52 = vector.shape_cast %51 : vector<1x2x32xf32> to vector<2x32xf32>
    %cst_23 = arith.constant dense<0.000000e+00> : vector<2x32xf32>
    %53 = tpu.matmul %47, %1, %cst_23 {dimension_numbers = #tpu.dot_dimension_numbers<[1], [0], [0], [1], [0, 0, 1, 1], [], []>} : vector<2x32xf32>, vector<32x32xf32>, vector<2x32xf32> -> vector<2x32xf32>
    %54 = arith.addf %52, %53 : vector<2x32xf32>
    %55 = math.tanh %54 : vector<2x32xf32>
    %c6 = arith.constant 6 : index
    %c0_24 = arith.constant 0 : index
    %c0_25 = arith.constant 0 : index
    %56 = vector.load %arg5[%c6, %c0_24, %c0_25] : memref<8x2x32xf32, #tpu.memory_space<vmem>>, vector<1x2x32xf32>
    %57 = vector.shape_cast %56 : vector<1x2x32xf32> to vector<2x32xf32>
    %58 = vector.shape_cast %55 : vector<2x32xf32> to vector<1x2x32xf32>
    tpu.vector_store %arg5[%c6, %c0_24, %c0_25], %58 {strides = array<i32>} : memref<8x2x32xf32, #tpu.memory_space<vmem>>, vector<1x2x32xf32>,
    %59 = vector.extract_strided_slice %0 {offsets = [7, 0, 0], sizes = [1, 2, 32], strides = [1, 1, 1]} : vector<8x2x32xf32> to vector<1x2x32xf32>
    %60 = vector.shape_cast %59 : vector<1x2x32xf32> to vector<2x32xf32>
    %cst_26 = arith.constant dense<0.000000e+00> : vector<2x32xf32>
    %61 = tpu.matmul %55, %1, %cst_26 {dimension_numbers = #tpu.dot_dimension_numbers<[1], [0], [0], [1], [0, 0, 1, 1], [], []>} : vector<2x32xf32>, vector<32x32xf32>, vector<2x32xf32> -> vector<2x32xf32>
    %62 = arith.addf %60, %61 : vector<2x32xf32>
    %63 = math.tanh %62 : vector<2x32xf32>
    %c7 = arith.constant 7 : index
    %c0_27 = arith.constant 0 : index
    %c0_28 = arith.constant 0 : index
    %64 = vector.load %arg5[%c7, %c0_27, %c0_28] : memref<8x2x32xf32, #tpu.memory_space<vmem>>, vector<1x2x32xf32>
    %65 = vector.shape_cast %64 : vector<1x2x32xf32> to vector<2x32xf32>
    %66 = vector.shape_cast %63 : vector<2x32xf32> to vector<1x2x32xf32>
    tpu.vector_store %arg5[%c7, %c0_27, %c0_28], %66 {strides = array<i32>} : memref<8x2x32xf32, #tpu.memory_space<vmem>>, vector<1x2x32xf32>,
    %c0_29 = arith.constant 0 : index
    %c0_30 = arith.constant 0 : index
    %67 = vector.load %arg2[%c0_29, %c0_30] : memref<32x128xf32, #tpu.memory_space<vmem>>, vector<32x128xf32>
    %c0_31 = arith.constant 0 : index
    %c0_32 = arith.constant 0 : index
    %68 = vector.load %arg3[%c0_31, %c0_32] : memref<1x128xf32, #tpu.memory_space<vmem>>, vector<1x128xf32>
    %c0_33 = arith.constant 0 : index
    %c0_34 = arith.constant 0 : index
    %c0_35 = arith.constant 0 : index
    %69 = vector.load %arg5[%c0_33, %c0_34, %c0_35] : memref<8x2x32xf32, #tpu.memory_space<vmem>>, vector<8x2x32xf32>
    %70 = vector.extract_strided_slice %69 {offsets = [0, 0, 0], sizes = [8, 1, 32], strides = [1, 1, 1]} : vector<8x2x32xf32> to vector<8x1x32xf32>
    %71 = vector.shape_cast %70 : vector<8x1x32xf32> to vector<8x32xf32>
    %cst_36 = arith.constant dense<0.000000e+00> : vector<8x128xf32>
    %72 = tpu.matmul %71, %67, %cst_36 {dimension_numbers = #tpu.dot_dimension_numbers<[1], [0], [0], [1], [0, 0, 1, 1], [], []>} : vector<8x32xf32>, vector<32x128xf32>, vector<8x128xf32> -> vector<8x128xf32>
    %73 = vector.broadcast %68 : vector<1x128xf32> to vector<8x128xf32>
    %74 = arith.addf %72, %73 : vector<8x128xf32>
    %c0_37 = arith.constant 0 : index
    %c0_38 = arith.constant 0 : index
    %75 = vector.load %arg4[%c0_37, %c0_38] : memref<16x128xf32, #tpu.memory_space<vmem>>, vector<8x128xf32>
    tpu.vector_store %arg4[%c0_37, %c0_38], %74 {strides = array<i32>} : memref<16x128xf32, #tpu.memory_space<vmem>>, vector<8x128xf32>,
    %76 = vector.extract_strided_slice %69 {offsets = [0, 1, 0], sizes = [8, 1, 32], strides = [1, 1, 1]} : vector<8x2x32xf32> to vector<8x1x32xf32>
    %77 = vector.shape_cast %76 : vector<8x1x32xf32> to vector<8x32xf32>
    %cst_39 = arith.constant dense<0.000000e+00> : vector<8x128xf32>
    %78 = tpu.matmul %77, %67, %cst_39 {dimension_numbers = #tpu.dot_dimension_numbers<[1], [0], [0], [1], [0, 0, 1, 1], [], []>} : vector<8x32xf32>, vector<32x128xf32>, vector<8x128xf32> -> vector<8x128xf32>
    %79 = vector.broadcast %68 : vector<1x128xf32> to vector<8x128xf32>
    %80 = arith.addf %78, %79 : vector<8x128xf32>
    %c8 = arith.constant 8 : index
    %c0_40 = arith.constant 0 : index
    %81 = vector.load %arg4[%c8, %c0_40] : memref<16x128xf32, #tpu.memory_space<vmem>>, vector<8x128xf32>
    tpu.vector_store %arg4[%c8, %c0_40], %80 {strides = array<i32>} : memref<16x128xf32, #tpu.memory_space<vmem>>, vector<8x128xf32>,
    return
  }
}

</mosaic_0001>

<bundles_post_ra>
// kernel: rnn_lm_forward.1
= control target key start
LH: loop header
LB: loop body
LE: loop exit
PB: predicated region body
PF: predicated region fallthrough
CT: control target
= control target key end

     0   :  { %v1147_v3 = vmov 0.0|0.0   ;;  %vm1148_vm0 = vmmov 0   ;;  %v1149_v6 = vmov 0.0   ;;  %s1321_s0 = inlined_call_operand.vmem [shape: f32[8,2,32], index: 0, kind: input, shape index: {}]   ;;  %s1322_s1 = inlined_call_operand.vmem [shape: f32[32,32], index: 1, kind: input, shape index: {}]   ;;  %s1323_s2 = inlined_call_operand.vmem [shape: f32[32,128], index: 2, kind: input, shape index: {}]   ;;  %s1324_s3 = inlined_call_operand.vmem [shape: f32[1,128], index: 3, kind: input, shape index: {}]   ;;  %s1325_s4 = inlined_call_operand.hbm [shape: f32[16,128], index: 4, kind: output, shape index: {}]  }
   0x1   :  { %v26_v0 = vld [vmem:[%s1322_s1] sm:$0xff]  ;;  %v27_v1 = vld [vmem:[%s1322_s1 + $0x8] sm:$0xff]  ;;  %v28_v2 = vld [vmem:[%s1322_s1 + $0x10] sm:$0xff]  ;;  %1041 = vmatprep.subr.bf16.mxu0 %v1147_v3  ;;  %939 = vmatprep.mubr.msk.f32.mxu0 %vm1148_vm0, %v1149_v6 }
   0x2   :  { %v1188_v4 = vpack.c.bf16 %v27_v1, %v26_v0  ;;  %v29_v5 = vld [vmem:[%s1322_s1 + $0x18] sm:$0xff] }
   0x3   :  { %9 = vsyncpa [#allocation4], 0  ;;  %1047 = vmatprep.subr.bf16.mxu1 %v1147_v3  ;;  %950 = vmatprep.mubr.msk.f32.mxu1 %vm1148_vm0, %v1149_v6  ;;  %v1199_v7 = vpack.c.bf16 %v29_v5, %v28_v2  ;;  %v18_v8 = vld [vmem:[%s1321_s0] sm:$0x3]  ;;  %vm106_vm1 = vcmask 254976   ;;  %vm30_vm2 = vcmask 261120  }
   0x4   :  { %1043 = vmatpush3.bf16.msra.mxu0 %v1188_v4  ;;  %1049 = vmatpush3.bf16.msra.mxu1 %v1188_v4  ;;  %v19_v13 = vld [vmem:[%s1321_s0 + $0x2] sm:$0x3]  ;;  %v20_v18 = vld [vmem:[%s1321_s0 + $0x4] sm:$0x3]  ;;  %v21_v23 = vld [vmem:[%s1321_s0 + $0x6] sm:$0x3] }
   0x5   :  { %1044 = vmatprep.subr.bf16.mxu0 %v1147_v3  ;;  %1050 = vmatprep.subr.bf16.mxu1 %v1147_v3  ;;  %v22_v28 = vld [vmem:[%s1321_s0 + $0x8] sm:$0x3]  ;;  %v23_v33 = vld [vmem:[%s1321_s0 + $0xa] sm:$0x3]  ;;  %v24_v38 = vld [vmem:[%s1321_s0 + $0xc] sm:$0x3] }
   0x6   :  { %v647_v43 = vld [vmem:[%s1323_s2] sm:$0xff]  ;;  %v648_v44 = vld [vmem:[%s1323_s2 + $0x8] sm:$0xff]  ;;  %v649_v45 = vld [vmem:[%s1323_s2 + $0x10] sm:$0xff]  ;;  %vm675_vm3 = vcmask 1041409   ;;  %vm678_vm4 = vcmask 1042434   ;;  %vm681_vm5 = vcmask 1043459  }
   0x7   :  { %v1090_v46 = vpack.c.bf16 %v648_v44, %v647_v43  ;;  %v650_v47 = vld [vmem:[%s1323_s2 + $0x18] sm:$0xff]  ;;  %v25_v49 = vld [vmem:[%s1321_s0 + $0xe] sm:$0x3]  ;;  %vm684_vm6 = vcmask 1044484   ;;  %vm687_vm7 = vcmask 1045509   ;;  %vm690_vm8 = vcmask 1046534  }
   0x8   :  { %1046 = vmatpush3.bf16.msra.mxu0 %v1199_v7  ;;  %1052 = vmatpush3.bf16.msra.mxu1 %v1199_v7  ;;  %v1093_v48 = vpack.c.bf16 %v650_v47, %v649_v45  ;;  %vm693_vm9 = vcmask 1047559   ;;  %s1150_s0 = smov [#allocation3]  }
   0x9   :  { %1053 = vmatprep.subr.bf16.mxu0 %v1147_v3  ;;  %1059 = vmatprep.subr.bf16.mxu1 %v1147_v3  ;;  %s860_s2 = sshll.u32 %s1150_s0, 4  ;;  %s861_s2 = int_to_ptr.vmem [resolvable:$true] %s860_s2 }
   0xa   :  { %s1123_s22 = scalar_lea.vmem %s861_s2, 256  ;;  %p1128_p1 = scmp.lt.s32.totalorder %s861_s2, %s861_s2 }
   0xb   :  { %940 = vmatmul.mubr.f32.vlgmr.msra.gmra.mrb[0].mxu0 %v1149_v6  ;;  %p1124_p0 = scmp.ne.s32.totalorder %s861_s2, %s1123_s22  ;;  %p1129_p2 = scmp.lt.s32.totalorder %s1123_s22, %s1123_s22 }
   0xc   :  { %1055 = vmatpush3.bf16.msra.mxu0 %v1188_v4  ;;  %961 = vmatprep.mubr.msk.f32.mxu0 %vm1148_vm0, %v1149_v6 }
   0xd   :  { %1056 = vmatprep.subr.bf16.mxu0 %v1147_v3  ;;  %p1130_p3 = por %p1129_p2, %p1128_p1 }
   0xf   :  { %p1131_p4 = pnand %p1130_p3, %p1124_p0 }
  0x10   :  { %1058 = vmatpush3.bf16.msra.mxu0 %v1199_v7 }
  0x11   :  { %1065 = vmatprep.subr.bf16.mxu0 %v1147_v3 }
  0xde   :  { %v100_v9 = vpop.f32.mrb[0].mxu0 }
  0xdf   :  { %v104_v10 = vadd.f32 %v100_v9, %v18_v8  ;;  %v941_v11 = vpop.f32.mrb[1].mxu0 }
  0xe1   :  { %1107 = vtanh.f32 %v104_v10 }
  0xeb   :  { %v1108_v12 = vpop.eup %1107 }
  0xec   :  { %107 = vst.msk [vmem:[#allocation2] sm:$0x3] %vm106_vm1, %v1108_v12  ;;  %951 = vmatmul.mubr.msk.f32.vlgmr.msra.gmra.mrb[0].mxu1 %vm30_vm2, %v1108_v12 }
  0xed   :  { %1061 = vmatpush3.bf16.msra.mxu1 %v1188_v4  ;;  %972 = vmatprep.mubr.msk.f32.mxu1 %vm1148_vm0, %v1149_v6 }
  0xee   :  { %1062 = vmatprep.subr.bf16.mxu1 %v1147_v3 }
  0xf1   :  { %1064 = vmatpush3.bf16.msra.mxu1 %v1199_v7 }
  0xf2   :  { %1071 = vmatprep.subr.bf16.mxu1 %v1147_v3 }
  0xf3   :  { %v652_v54 = vld [vmem:[#allocation2] sm:$0x3] }
  0xf4   :  { %v768_v61 = vrot.slane %v652_v54, 1 }
 0x1bf   :  { %v177_v14 = vpop.f32.mrb[0].mxu1 }
 0x1c0   :  { %v181_v15 = vadd.f32 %v177_v14, %v19_v13  ;;  %v952_v16 = vpop.f32.mrb[1].mxu1 }
 0x1c2   :  { %1109 = vtanh.f32 %v181_v15 }
 0x1cc   :  { %v1110_v17 = vpop.eup %1109 }
 0x1cd   :  { %184 = vst.msk [vmem:[#allocation2 + $0x2] sm:$0x3] %vm106_vm1, %v1110_v17  ;;  %962 = vmatmul.mubr.msk.f32.vlgmr.msra.gmra.mrb[2].mxu0 %vm30_vm2, %v1110_v17 }
 0x1ce   :  { %1067 = vmatpush3.bf16.msra.mxu0 %v1188_v4  ;;  %983 = vmatprep.mubr.msk.f32.mxu0 %vm1148_vm0, %v1149_v6 }
 0x1cf   :  { %1068 = vmatprep.subr.bf16.mxu0 %v1147_v3 }
 0x1d2   :  { %1070 = vmatpush3.bf16.msra.mxu0 %v1199_v7 }
 0x1d3   :  { %1077 = vmatprep.subr.bf16.mxu0 %v1147_v3 }
 0x1d4   :  { %v653_v53 = vld [vmem:[#allocation2 + $0x2] sm:$0x3] }
 0x1d5   :  { %v674_v58 = vrot.slane %v653_v53, 7  ;;  %v769_v2 = vsel %vm675_vm3, %v653_v53, %v768_v61 }
 0x2a0   :  { %v254_v19 = vpop.f32.mrb[2].mxu0 }
 0x2a1   :  { %v258_v20 = vadd.f32 %v254_v19, %v20_v18  ;;  %v963_v21 = vpop.f32.mrb[3].mxu0 }
 0x2a3   :  { %1111 = vtanh.f32 %v258_v20 }
 0x2ad   :  { %v1112_v22 = vpop.eup %1111 }
 0x2ae   :  { %261 = vst.msk [vmem:[#allocation2 + $0x4] sm:$0x3] %vm106_vm1, %v1112_v22  ;;  %973 = vmatmul.mubr.msk.f32.vlgmr.msra.gmra.mrb[2].mxu1 %vm30_vm2, %v1112_v22 }
 0x2af   :  { %1073 = vmatpush3.bf16.msra.mxu1 %v1188_v4  ;;  %994 = vmatprep.mubr.msk.f32.mxu1 %vm1148_vm0, %v1149_v6 }
 0x2b0   :  { %1074 = vmatprep.subr.bf16.mxu1 %v1147_v3 }
 0x2b3   :  { %1076 = vmatpush3.bf16.msra.mxu1 %v1199_v7 }
 0x2b4   :  { %1083 = vmatprep.subr.bf16.mxu1 %v1147_v3 }
 0x2b5   :  { %v654_v55 = vld [vmem:[#allocation2 + $0x4] sm:$0x3] }
 0x2b6   :  { %v677_v60 = vrot.slane %v654_v55, 6  ;;  %v770_v63 = vrot.slane %v654_v55, 7 }
 0x2b8   :  { %v771_v11 = vsel %vm678_vm4, %v770_v63, %v769_v2 }
 0x381   :  { %v331_v24 = vpop.f32.mrb[2].mxu1 }
 0x382   :  { %v335_v25 = vadd.f32 %v331_v24, %v21_v23  ;;  %v974_v26 = vpop.f32.mrb[3].mxu1 }
 0x383   :  { %v878_v26 = vld [vmem:[%s1324_s3] ss:$0 sm:$0xff] }
 0x384   :  { %1113 = vtanh.f32 %v335_v25 }
 0x38e   :  { %v1114_v27 = vpop.eup %1113 }
 0x38f   :  { %338 = vst.msk [vmem:[#allocation2 + $0x6] sm:$0x3] %vm106_vm1, %v1114_v27  ;;  %984 = vmatmul.mubr.msk.f32.vlgmr.msra.gmra.mrb[4].mxu0 %vm30_vm2, %v1114_v27 }
 0x390   :  { %1079 = vmatpush3.bf16.msra.mxu0 %v1188_v4  ;;  %1005 = vmatprep.mubr.msk.f32.mxu0 %vm1148_vm0, %v1149_v6 }
 0x391   :  { %1080 = vmatprep.subr.bf16.mxu0 %v1147_v3 }
 0x394   :  { %1082 = vmatpush3.bf16.msra.mxu0 %v1199_v7 }
 0x395   :  { %1089 = vmatprep.subr.bf16.mxu0 %v1147_v3 }
 0x396   :  { %v655_v57 = vld [vmem:[#allocation2 + $0x6] sm:$0x3] }
 0x397   :  { %v680_v1 = vrot.slane %v655_v57, 5 }
 0x462   :  { %v408_v29 = vpop.f32.mrb[4].mxu0 }
 0x463   :  { %v412_v30 = vadd.f32 %v408_v29, %v22_v28  ;;  %v985_v31 = vpop.f32.mrb[5].mxu0 }
 0x465   :  { %1115 = vtanh.f32 %v412_v30 }
 0x46f   :  { %v1116_v32 = vpop.eup %1115 }
 0x470   :  { %415 = vst.msk [vmem:[#allocation2 + $0x8] sm:$0x3] %vm106_vm1, %v1116_v32  ;;  %995 = vmatmul.mubr.msk.f32.vlgmr.msra.gmra.mrb[4].mxu1 %vm30_vm2, %v1116_v32 }
 0x471   :  { %1085 = vmatpush3.bf16.msra.mxu1 %v1188_v4  ;;  %1016 = vmatprep.mubr.msk.f32.mxu1 %vm1148_vm0, %v1149_v6  ;;  %v676_v4 = vsel %vm675_vm3, %v674_v58, %v652_v54 }
 0x472   :  { %1086 = vmatprep.subr.bf16.mxu1 %v1147_v3 }
 0x475   :  { %1088 = vmatpush3.bf16.msra.mxu1 %v1199_v7  ;;  %v679_v7 = vsel %vm678_vm4, %v677_v60, %v676_v4 }
 0x476   :  { %1095 = vmatprep.subr.bf16.mxu1 %v1147_v3  ;;  %v682_v13 = vsel %vm681_vm5, %v680_v1, %v679_v7 }
 0x477   :  { %v656_v59 = vld [vmem:[#allocation2 + $0x8] sm:$0x3] }
 0x478   :  { %v683_v5 = vrot.slane %v656_v59, 4 }
 0x47a   :  { %v685_v16 = vsel %vm684_vm6, %v683_v5, %v682_v13 }
 0x543   :  { %v485_v34 = vpop.f32.mrb[4].mxu1 }
 0x544   :  { %v489_v35 = vadd.f32 %v485_v34, %v23_v33  ;;  %v996_v36 = vpop.f32.mrb[5].mxu1 }
 0x546   :  { %1117 = vtanh.f32 %v489_v35 }
 0x550   :  { %v1118_v37 = vpop.eup %1117 }
 0x551   :  { %492 = vst.msk [vmem:[#allocation2 + $0xa] sm:$0x3] %vm106_vm1, %v1118_v37  ;;  %1006 = vmatmul.mubr.msk.f32.vlgmr.msra.gmra.mrb[6].mxu0 %vm30_vm2, %v1118_v37 }
 0x552   :  { %1027 = vmatprep.mubr.msk.f32.mxu0 %vm1148_vm0, %v1149_v6  ;;  %1091 = vmatpush3.bf16.msra.mxu0 %v1090_v46 }
 0x553   :  { %1092 = vmatprep.subr.bf16.mxu0 %v1147_v3 }
 0x556   :  { %1094 = vmatpush3.bf16.msra.mxu0 %v1093_v48 }
 0x558   :  { %v657_v62 = vld [vmem:[#allocation2 + $0xa] sm:$0x3] }
 0x559   :  { %v686_v8 = vrot.slane %v657_v62, 3  ;;  %v776_v9 = vrot.slane %v657_v62, 4 }
 0x55b   :  { %v688_v18 = vsel %vm687_vm7, %v686_v8, %v685_v16 }
 0x624   :  { %v562_v39 = vpop.f32.mrb[6].mxu0 }
 0x625   :  { %v566_v40 = vadd.f32 %v562_v39, %v24_v38  ;;  %v1007_v41 = vpop.f32.mrb[7].mxu0 }
 0x627   :  { %1119 = vtanh.f32 %v566_v40 }
 0x631   :  { %v1120_v42 = vpop.eup %1119 }
 0x632   :  { %569 = vst.msk [vmem:[#allocation2 + $0xc] sm:$0x3] %vm106_vm1, %v1120_v42  ;;  %1017 = vmatmul.mubr.msk.f32.vlgmr.msra.gmra.mrb[6].mxu1 %vm30_vm2, %v1120_v42 }
 0x633   :  { %1038 = vmatprep.mubr.msk.f32.mxu1 %vm1148_vm0, %v1149_v6  ;;  %1097 = vmatpush3.bf16.msra.mxu1 %v1090_v46  ;;  %v774_v6 = vrot.slane %v656_v59, 5 }
 0x634   :  { %1098 = vmatprep.subr.bf16.mxu1 %v1147_v3  ;;  %v772_v3 = vrot.slane %v655_v57, 6 }
 0x636   :  { %v773_v14 = vsel %vm681_vm5, %v772_v3, %v771_v11 }
 0x637   :  { %1100 = vmatpush3.bf16.msra.mxu1 %v1093_v48  ;;  %v775_v17 = vsel %vm684_vm6, %v774_v6, %v773_v14 }
 0x638   :  { %v777_v20 = vsel %vm687_vm7, %v776_v9, %v775_v17 }
 0x639   :  { %v658_v0 = vld [vmem:[#allocation2 + $0xc] sm:$0x3] }
 0x63a   :  { %v689_v10 = vrot.slane %v658_v0, 2  ;;  %v778_v12 = vrot.slane %v658_v0, 3 }
 0x63c   :  { %v691_v22 = vsel %vm690_vm8, %v689_v10, %v688_v18  ;;  %v779_v23 = vsel %vm690_vm8, %v778_v12, %v777_v20 }
 0x705   :  { %v639_v50 = vpop.f32.mrb[6].mxu1 }
 0x706   :  { %v643_v51 = vadd.f32 %v639_v50, %v25_v49  ;;  %v1018_v52 = vpop.f32.mrb[7].mxu1 }
 0x708   :  { %1121 = vtanh.f32 %v643_v51 }
 0x712   :  { %v1122_v56 = vpop.eup %1121 }
 0x713   :  { %646 = vst.msk [vmem:[#allocation2 + $0xe] sm:$0x3] %vm106_vm1, %v1122_v56 }
 0x71a   :  { %v659_v15 = vld [vmem:[#allocation2 + $0xe] sm:$0x3] }
 0x71b   :  { %v692_v19 = vrot.slane %v659_v15, 1  ;;  %v780_v21 = vrot.slane %v659_v15, 2 }
 0x71d   :  { %v694_v24 = vsel %vm693_vm9, %v692_v19, %v691_v22  ;;  %v781_v25 = vsel %vm693_vm9, %v780_v21, %v779_v23 }
 0x71e   :  { %1028 = vmatmul.mubr.msk.f32.vlgmr.msra.gmra.mrb[8].mxu0 %vm30_vm2, %v694_v24  ;;  %1039 = vmatmul.mubr.msk.f32.vlgmr.msra.gmra.mrb[8].mxu1 %vm30_vm2, %v781_v25 }
 0x7f1   :  { %v763_v27 = vpop.f32.mrb[8].mxu0  ;;  %v850_v28 = vpop.f32.mrb[8].mxu1 }
 0x7f2   :  { %v764_v29 = vadd.f32 %v878_v26, %v763_v27  ;;  %v851_v30 = vadd.f32 %v878_v26, %v850_v28  ;;  %v1029_v31 = vpop.f32.mrb[9].mxu0  ;;  %v1040_v32 = vpop.f32.mrb[9].mxu1 }
 0x7f4   :  { %767 = vst [vmem:[#allocation3] sm:$0xff] %v764_v29  ;;  %854 = vst [vmem:[#allocation3 + $0x8] sm:$0xff] %v851_v30 }
 0x7f5   :  { %1134 = shalt.err (!%p1131_p4)
}
 0x7f6   :  { %s1135_s3 = scalar_lea.hbm %s1325_s4, 256 }
 0x7f7   :  { %p1136_p5 = scmp.ne.s32.totalorder %s1325_s4, %s1135_s3  ;;  %p1139_p6 = scmp.lt.u32.totalorder %s1135_s3, %s1325_s4 }
 0x7f9   :  { %p1141_p7 = pnand %p1139_p6, %p1136_p5 }
 0x7fb   :  { %1144 = shalt.err (!%p1141_p7)
}
 0x7fc   :  { %s1151_s28 = smov 128   ;;  %s1152_s29 = smov 8  }
 0x7fd   :  { %866 = dma.vmem_to_hbm [thread:$0]  %s861_s2, 256, %s1325_s4, [#allocation4], %s1151_s28, %s1151_s28, %s1152_s29  }
 0x7fe   :  { %1145 = dma.done.wait [#allocation4], 256  }
 0x7ff   :  { %1146 = vsyncadd [#allocation4], 4294967040 }
 0x800   :  { %870 = vsyncpa [#allocation4], 1 }

</bundles_post_ra>
